<compile_context>
chip_gen: v5e
topology: v5e:2x2
jax: 0.10.0
libtpu: 0.0.40
codegen_flags: <defaults>
</compile_context>

<pallas_src>
import functools

import jax
import jax.numpy as jnp
from jax.experimental import pallas as pl
from jax.experimental.pallas import tpu as pltpu

LANE = 128     # vreg lane width
SUBLANE = 8    # f32 sublane count


def mlp_kernel(x_ref, w1_ref, b1_ref, w2_ref, b2_ref, o_ref, *, n_features):
    # ---- layer 1: hidden = relu(x @ W1 + b1), done on the VPU -------------
    x = x_ref[...]                                   # (TB, n_features) f32
    w1 = w1_ref[...]                                 # (n_features, n_hidden)
    h = jnp.broadcast_to(b1_ref[...], (x.shape[0], w1.shape[1]))
    for f in range(n_features):                      # static -> unrolled FMAs
        h = h + x[:, f:f + 1] * w1[f:f + 1, :]
    h = jnp.maximum(h, 0.0)

    # ---- layer 2: out = h @ W2 + b2, on the MXU ---------------------------
    # w2/b2 are lane-padded to a multiple of 128 so this is an unmasked store.
    y = jnp.dot(h, w2_ref[...], preferred_element_type=jnp.float32)
    o_ref[...] = (y + b2_ref[...]).astype(o_ref.dtype)


def prepare_params(w1, b1, w2, b2):
    """One-time parameter repack (call at init time, NOT per forward pass).

    w1: (n_hidden, n_features)   b1: (n_hidden,)     [PyTorch Linear layout]
    w2: (n_output, n_hidden)     b2: (n_output,)
    Returns kernel-layout params and the true n_output.
    """
    n_hidden, n_features = w1.shape
    n_output = w2.shape[0]
    n_out_pad = max(LANE, ((n_output + LANE - 1) // LANE) * LANE)

    w1_t = jnp.asarray(w1, jnp.float32).T                      # (n_features, n_hidden)
    b1_r = jnp.asarray(b1, jnp.float32).reshape(1, n_hidden)   # (1, n_hidden)
    w2_t = jnp.zeros((n_hidden, n_out_pad), jnp.float32)
    w2_t = w2_t.at[:, :n_output].set(jnp.asarray(w2, jnp.float32).T)
    b2_r = jnp.zeros((1, n_out_pad), jnp.float32)
    b2_r = b2_r.at[:, :n_output].set(jnp.asarray(b2, jnp.float32))
    return (w1_t, b1_r, w2_t, b2_r), n_output


@functools.partial(jax.jit, static_argnames=("n_output", "block_b"))
def net_forward(x, params, *, n_output, block_b=512):
    """Pallas equivalent of Net.forward(x) = out(relu(hidden(x))).

    x      : (B, n_features) float32
    params : output of prepare_params()
    returns: (B, n_output)   float32
    """
    w1_t, b1_r, w2_t, b2_r = params
    B, n_features = x.shape
    n_hidden = w1_t.shape[1]
    n_out_pad = w2_t.shape[1]

    # Batch tile: multiple of the f32 sublane (8), capped at block_b so VMEM
    # per step stays tiny (fits comfortably under v7x's 32 MiB scoped default).
    tb = min(block_b, ((B + SUBLANE - 1) // SUBLANE) * SUBLANE)
    num_blocks = pl.cdiv(B, tb)
    b_pad = num_blocks * tb
    if b_pad != B:
        x = jnp.pad(x, ((0, b_pad - B), (0, 0)))

    kernel = functools.partial(mlp_kernel, n_features=n_features)

    out = pl.pallas_call(
        kernel,
        out_shape=jax.ShapeDtypeStruct((b_pad, n_out_pad), x.dtype),
        grid=(num_blocks,),
        in_specs=[
            # batch-tiled activations
            pl.BlockSpec((tb, n_features), lambda i: (i, 0)),
            # weights / biases: full arrays, constant block index -> resident
            # in VMEM across every grid step (single DMA).
            pl.BlockSpec((n_features, n_hidden), lambda i: (0, 0)),
            pl.BlockSpec((1, n_hidden), lambda i: (0, 0)),
            pl.BlockSpec((n_hidden, n_out_pad), lambda i: (0, 0)),
            pl.BlockSpec((1, n_out_pad), lambda i: (0, 0)),
        ],
        out_specs=pl.BlockSpec((tb, n_out_pad), lambda i: (i, 0)),
        compiler_params=pltpu.CompilerParams(
            dimension_semantics=("parallel",)),
    )(x, w1_t, b1_r, w2_t, b2_r)

    # Drop batch padding and the lane padding of the output layer.
    return out[:B, :n_output]


def init_linear(key, out_features, in_features):
    """Deterministic PyTorch-style Linear init: U(-1/sqrt(fan_in), 1/sqrt(fan_in))."""
    kw, kb = jax.random.split(key)
    bound = 1.0 / (in_features ** 0.5)
    w = jax.random.uniform(kw, (out_features, in_features),
                           minval=-bound, maxval=bound, dtype=jnp.float32)
    b = jax.random.uniform(kb, (out_features,),
                           minval=-bound, maxval=bound, dtype=jnp.float32)
    return w, b


if __name__ == "__main__":
    # Shapes implied by the module usage: n_features=2, n_output=2 (binary
    # classification of 2-D points), small hidden size.
    batch = 8
    n_features = 2
    n_hidden = 32
    n_output = 2

    key = jax.random.PRNGKey(0)
    k_x0, k_x1, k_h, k_o = jax.random.split(key, 4)

    # Synthetic input mimicking the two Gaussian clusters in the reference script.
    x0 = 2.0 + jax.random.normal(k_x0, (batch // 2, n_features), dtype=jnp.float32)
    x1 = -2.0 + jax.random.normal(k_x1, (batch // 2, n_features), dtype=jnp.float32)
    x = jnp.concatenate([x0, x1], axis=0)

    w1, b1 = init_linear(k_h, n_hidden, n_features)
    w2, b2 = init_linear(k_o, n_output, n_hidden)

    # One-time repack, hoisted out of the per-call path.
    params, n_out = prepare_params(w1, b1, w2, b2)

    out = net_forward(x, params, n_output=n_out)
    out = jax.block_until_ready(out)

    # Pure-JAX reference check (same math, no Pallas).
    ref = jnp.maximum(x @ w1.T + b1, 0.0) @ w2.T + b2
    assert out.shape == (batch, n_output)
    assert jnp.allclose(out, ref, atol=1e-5, rtol=1e-5)

    print("KERNEL_OK")
</pallas_src>

<mosaic_0001>
module attributes {stable_mosaic.version = 11 : i64} {
  func.func @mlp_kernel(%arg0: i32, %arg1: memref<8x2xf32, #tpu.memory_space<vmem>>, %arg2: memref<2x32xf32, #tpu.memory_space<vmem>>, %arg3: memref<1x32xf32, #tpu.memory_space<vmem>>, %arg4: memref<32x128xf32, #tpu.memory_space<vmem>>, %arg5: memref<1x128xf32, #tpu.memory_space<vmem>>, %arg6: memref<8x128xf32, #tpu.memory_space<vmem>>) attributes {dimension_semantics = [#tpu.dimension_semantics<parallel>], iteration_bounds = array<i64: 1>, scalar_prefetch = 0 : i64, scratch_operands = 0 : i64, tpu.core_type = #tpu.core_type<tc>, window_params = [{transform_indices = @transform_0, window_bounds = array<i64: 8, 2>}, {pipeline_mode = #tpu.pipeline_mode<synchronous>, transform_indices = @transform_1, window_bounds = array<i64: 2, 32>}, {pipeline_mode = #tpu.pipeline_mode<synchronous>, transform_indices = @transform_2, window_bounds = array<i64: 1, 32>}, {pipeline_mode = #tpu.pipeline_mode<synchronous>, transform_indices = @transform_3, window_bounds = array<i64: 32, 128>}, {pipeline_mode = #tpu.pipeline_mode<synchronous>, transform_indices = @transform_4, window_bounds = array<i64: 1, 128>}, {transform_indices = @transform_5, window_bounds = array<i64: 8, 128>}]} {
    %c0 = arith.constant 0 : index
    %c0_0 = arith.constant 0 : index
    %0 = vector.load %arg1[%c0, %c0_0] : memref<8x2xf32, #tpu.memory_space<vmem>>, vector<8x2xf32>
    %c0_1 = arith.constant 0 : index
    %c0_2 = arith.constant 0 : index
    %1 = vector.load %arg2[%c0_1, %c0_2] : memref<2x32xf32, #tpu.memory_space<vmem>>, vector<2x32xf32>
    %c0_3 = arith.constant 0 : index
    %c0_4 = arith.constant 0 : index
    %2 = vector.load %arg3[%c0_3, %c0_4] : memref<1x32xf32, #tpu.memory_space<vmem>>, vector<1x32xf32>
    %3 = vector.shape_cast %2 : vector<1x32xf32> to vector<1x32xf32>
    %4 = vector.broadcast %3 : vector<1x32xf32> to vector<8x32xf32>
    %5 = vector.extract_strided_slice %0 {offsets = [0, 0], sizes = [8, 1], strides = [1, 1]} : vector<8x2xf32> to vector<8x1xf32>
    %6 = vector.extract_strided_slice %1 {offsets = [0, 0], sizes = [1, 32], strides = [1, 1]} : vector<2x32xf32> to vector<1x32xf32>
    %7 = vector.broadcast %5 : vector<8x1xf32> to vector<8x32xf32>
    %8 = vector.broadcast %6 : vector<1x32xf32> to vector<8x32xf32>
    %9 = arith.mulf %7, %8 : vector<8x32xf32>
    %10 = arith.addf %4, %9 : vector<8x32xf32>
    %11 = vector.extract_strided_slice %0 {offsets = [0, 1], sizes = [8, 1], strides = [1, 1]} : vector<8x2xf32> to vector<8x1xf32>
    %12 = vector.extract_strided_slice %1 {offsets = [1, 0], sizes = [1, 32], strides = [1, 1]} : vector<2x32xf32> to vector<1x32xf32>
    %13 = vector.broadcast %11 : vector<8x1xf32> to vector<8x32xf32>
    %14 = vector.broadcast %12 : vector<1x32xf32> to vector<8x32xf32>
    %15 = arith.mulf %13, %14 : vector<8x32xf32>
    %16 = arith.addf %10, %15 : vector<8x32xf32>
    %cst = arith.constant 0.000000e+00 : f32
    %17 = vector.broadcast %cst : f32 to vector<8x32xf32>
    %18 = arith.maximumf %16, %17 : vector<8x32xf32>
    %c0_5 = arith.constant 0 : index
    %c0_6 = arith.constant 0 : index
    %19 = vector.load %arg4[%c0_5, %c0_6] : memref<32x128xf32, #tpu.memory_space<vmem>>, vector<32x128xf32>
    %cst_7 = arith.constant dense<0.000000e+00> : vector<8x128xf32>
    %20 = tpu.matmul %18, %19, %cst_7 {dimension_numbers = #tpu.dot_dimension_numbers<[1], [0], [0], [1], [0, 0, 1, 1], [], []>} : vector<8x32xf32>, vector<32x128xf32>, vector<8x128xf32> -> vector<8x128xf32>
    %c0_8 = arith.constant 0 : index
    %c0_9 = arith.constant 0 : index
    %21 = vector.load %arg5[%c0_8, %c0_9] : memref<1x128xf32, #tpu.memory_space<vmem>>, vector<1x128xf32>
    %22 = vector.broadcast %21 : vector<1x128xf32> to vector<8x128xf32>
    %23 = arith.addf %20, %22 : vector<8x128xf32>
    %c0_10 = arith.constant 0 : index
    %c0_11 = arith.constant 0 : index
    %24 = vector.load %arg6[%c0_10, %c0_11] : memref<8x128xf32, #tpu.memory_space<vmem>>, vector<8x128xf32>
    tpu.vector_store %arg6[%c0_10, %c0_11], %23 {strides = array<i32>} : memref<8x128xf32, #tpu.memory_space<vmem>>, vector<8x128xf32>,
    return
  }
  func.func @transform_0(%arg0: i32) -> (i32, i32) {
    %c0_i32 = arith.constant 0 : i32
    %c0_i32_0 = arith.constant 0 : i32
    return %arg0, %c0_i32 : i32, i32
  }
  func.func @transform_1(%arg0: i32) -> (i32, i32) {
    %c0_i32 = arith.constant 0 : i32
    %c0_i32_0 = arith.constant 0 : i32
    %c0_i32_1 = arith.constant 0 : i32
    return %c0_i32, %c0_i32_0 : i32, i32
  }
  func.func @transform_2(%arg0: i32) -> (i32, i32) {
    %c0_i32 = arith.constant 0 : i32
    %c0_i32_0 = arith.constant 0 : i32
    %c0_i32_1 = arith.constant 0 : i32
    return %c0_i32, %c0_i32_0 : i32, i32
  }
  func.func @transform_3(%arg0: i32) -> (i32, i32) {
    %c0_i32 = arith.constant 0 : i32
    %c0_i32_0 = arith.constant 0 : i32
    %c0_i32_1 = arith.constant 0 : i32
    return %c0_i32, %c0_i32_0 : i32, i32
  }
  func.func @transform_4(%arg0: i32) -> (i32, i32) {
    %c0_i32 = arith.constant 0 : i32
    %c0_i32_0 = arith.constant 0 : i32
    %c0_i32_1 = arith.constant 0 : i32
    return %c0_i32, %c0_i32_0 : i32, i32
  }
  func.func @transform_5(%arg0: i32) -> (i32, i32) {
    %c0_i32 = arith.constant 0 : i32
    %c0_i32_0 = arith.constant 0 : i32
    return %arg0, %c0_i32 : i32, i32
  }
}

</mosaic_0001>

<bundles_post_ra>
// kernel: net_forward.1
= control target key start
LH: loop header
LB: loop body
LE: loop exit
PB: predicated region body
PF: predicated region fallthrough
CT: control target
= control target key end

     0   :  { %10 = vsyncpa [#allocation3], 0  ;;  %s132_s21 = smov [#allocation2]   ;;  %s133_s23 = smov 128   ;;  %s185_s0 = inlined_call_operand.vmem [shape: f32[8,2], index: 0, kind: input, shape index: {}]   ;;  %s186_s1 = inlined_call_operand.vmem [shape: f32[2,32], index: 1, kind: input, shape index: {}]   ;;  %s187_s2 = inlined_call_operand.vmem [shape: f32[1,32], index: 2, kind: input, shape index: {}]   ;;  %s188_s3 = inlined_call_operand.hbm [shape: f32[32,128], index: 3, kind: input, shape index: {}]   ;;  %s189_s4 = inlined_call_operand.vmem [shape: f32[1,128], index: 4, kind: input, shape index: {}]   ;;  %s190_s5 = inlined_call_operand.vmem [shape: f32[8,128], index: 5, kind: output, shape index: {}]  }
   0x1   :  { %s21_s20 = sshll.u32 %s188_s3, 4  ;;  %s23_s22 = sshll.u32 %s132_s21, 4  ;;  %s22_s20 = int_to_ptr.hbm [resolvable:$true] %s21_s20  ;;  %s24_s22 = int_to_ptr.vmem [resolvable:$true] %s23_s22 }
   0x2   :  { %s134_s24 = smov 8  }
   0x3   :  { %29 = dma.hbm_to_vmem [thread:$0]  %s22_s20, 512, %s24_s22, [#allocation3], %s133_s23, %s133_s23, %s134_s24  }
   0x4   :  { %130 = dma.done.wait [#allocation3], 512  }
   0x5   :  { %131 = vsyncadd [#allocation3], 4294966784  ;;  %v135_v0 = vmov 0   ;;  %v36_v1 = vld [vmem:[%s185_s0] sm:$0xff]  ;;  %v136_v2 = vmov 1   ;;  %v61_v3 = vld [vmem:[#allocation2 + $0x18] sm:$0xff] }
   0x6   :  { %102 = vset.pattern.permute.xlu0 %v135_v0  ;;  %82 = vmatpush.msra.mxu0 %v61_v3  ;;  %v60_v4 = vld [vmem:[#allocation2 + $0x10] sm:$0xff]  ;;  %v59_v5 = vld [vmem:[#allocation2 + $0x8] sm:$0xff]  ;;  %v58_v6 = vld [vmem:[#allocation2] sm:$0xff]  ;;  %vm66_vm0 = vcmask 261120  }
   0x7   :  { %44 = vperm.xlu0 %102, %v36_v1   ;;  %v37_v7 = vld [vmem:[%s186_s1] sm:$0x3] }
   0x8   :  { %83 = vmatpush.msra.mxu0 %v60_v4  ;;  %v47_v9 = vperm.slane %v37_v7, 0  ;;  %v104_v10 = vld [vmem:[%s187_s2] ss:$0 sm:$0xff]  ;;  %v54_v12 = vperm.slane %v37_v7, 1 }
   0x9   :  { %v105_v18 = vld [vmem:[%s189_s4] ss:$0 sm:$0xff] }
   0xa   :  { %84 = vmatpush.msra.mxu0 %v59_v5 }
   0xc   :  { %85 = vmatpush.msra.mxu0 %v58_v6 }
   0xf   :  { %103 = vset.pattern.permute.xlu0 %v136_v2 }
  0x10   :  { %51 = vperm.xlu0 %103, %v36_v1  }
  0x79   :  { %v45_v8 = vpop.permute.xlu0 %44 }
  0x7a   :  { %v48_v11 = vmul.f32 %v47_v9, %v45_v8 }
  0x7c   :  { %v49_v14 = vadd.f32 %v104_v10, %v48_v11 }
  0x82   :  { %v52_v13 = vpop.permute.xlu0 %51 }
  0x83   :  { %v55_v15 = vmul.f32 %v54_v12, %v52_v13 }
  0x85   :  { %v56_v16 = vadd.f32 %v55_v15, %v49_v14 }
  0x87   :  { %v57_v17 = vmax.f32 %v56_v16, 0.0 }
  0x89   :  { %96 = vmatmul.msk.f32.vlgmr.msra.gmra.mxu0 %vm66_vm0, %v57_v17 }
 0x106   :  { %v87_v19 = vpop.f32.mrf.mxu0 }
 0x107   :  { %v88_v20 = vadd.f32 %v105_v18, %v87_v19 }
 0x109   :  { %90 = vst [vmem:[%s190_s5] sm:$0xff] %v88_v20 }
 0x10a   :  { %95 = vsyncpa [#allocation3], 1 }

</bundles_post_ra>
